<compile_context>
chip_gen: v7x
topology: tpu7x:2x2x1
jax: 0.10.0
libtpu: 0.0.40
codegen_flags: <defaults>
</compile_context>

<pallas_src>
import jax
import jax.numpy as jnp
from jax.experimental import pallas as pl
from jax.experimental.pallas import tpu as pltpu


def modeleq_kernel(flag_ref,      # SMEM, (1,) int32  -- vaccination active?
                   mats_ref,      # VMEM, (N, 5N)     : [A^T | T^T | B^T | V1^T | V2^T]
                   y_ref,         # VMEM, (tm, N) f32 -- batch of states (rows)
                   out_ref):      # VMEM, (tm, N) f32 -- dY/dt
    N = mats_ref.shape[0]

    y = y_ref[...]
    if y.dtype != mats_ref.dtype:          # trace-time branch (bf16 operand option)
        y = y.astype(mats_ref.dtype)

    # Single MXU matmul producing all five matvecs in one lane-dense slab.
    z = jnp.dot(y, mats_ref[...], preferred_element_type=jnp.float32)   # (tm, 5N)

    # Lane-aligned (multiples of 128) static slices of the result slab.
    Ay  = z[:, 0 * N:1 * N]
    Ty  = z[:, 1 * N:2 * N]
    By  = z[:, 2 * N:3 * N]
    V1y = z[:, 3 * N:4 * N]
    V2y = z[:, 4 * N:5 * N]

    active = flag_ref[0] > 0
    # Safe denominator: never divide by the (discarded) V2y when inactive.
    # The divide runs as an EUP approx reciprocal (free slot).
    denom = jnp.where(active, V2y, jnp.ones_like(V2y))
    vacc = jnp.where(active, V1y * pl.reciprocal(denom, approx=True),
                     jnp.zeros_like(V1y))

    out_ref[...] = (Ay * Ty + By + vacc).astype(out_ref.dtype)


def prepare_modeleq_mats(A, T_mat, B, V_1, V_2, dtype=jnp.float32):
    """One-time preprocessing: transpose + cast + concatenate the constant
    matrices so each RHS evaluation does a single (M,N)x(N,5N) matmul.
    Pass dtype=jnp.bfloat16 to halve the operand footprint/DMA (validate ODE
    accuracy against the f32 reference first)."""
    mats_t = [jnp.asarray(m, dtype).T for m in (A, T_mat, B, V_1, V_2)]
    return jnp.concatenate(mats_t, axis=1)          # (N, 5N)


def _round_up(x, m):
    return ((x + m - 1) // m) * m


def modeleq_rhs_batched(t, Y, mats_cat, t_start, T_period, *, block_m=128):
    """Batched RHS: dY/dt for M states at once.  Y: (M, N) -> (M, N).

    The constant (N, 5N) operand has a constant index_map so it is DMA'd once
    and stays VMEM-resident across all batch-tile grid steps; the batch axis
    is "parallel" so v7x's two TensorCores split the row tiles.
    Use block_m=256 on v6e/v7x for full MXU-row fill if M is large.
    """
    M, N = Y.shape
    assert mats_cat.shape == (N, 5 * N)

    # get_vacc_bool(t): t_start < t < t_start + T   (scalar glue, host/JAX side)
    flag = jnp.asarray(
        (t > t_start) & (t < t_start + T_period), dtype=jnp.int32).reshape(1)

    Y = Y.astype(jnp.float32)

    # Row tile: >=8 rows (fill the f32 sublane dim), up to block_m MXU rows.
    m_pad = _round_up(max(M, 1), 8)
    tm = min(block_m, m_pad)
    m_pad = _round_up(m_pad, tm)
    if m_pad != M:
        Y = jnp.pad(Y, ((0, m_pad - M), (0, 0)), mode='edge')

    # VMEM footprint guard: resident operand is 20*N^2 bytes (40*N^2 with
    # double buffering) -- ~0.31 MiB at N=128.  If s_mtx grows, raise the
    # scoped VMEM limit (or tile the K dimension / drop to bf16) before v7x's
    # 64 MiB physical VMEM is hit.
    itemsize = jnp.dtype(mats_cat.dtype).itemsize
    mats_bytes = 2 * (N * 5 * N * itemsize)                 # double-buffered operand
    tile_bytes = 2 * 2 * (tm * N * 4) + tm * 5 * N * 4      # y/out buffers + z slab
    compiler_kwargs = dict(dimension_semantics=("parallel",))
    if mats_bytes + tile_bytes > 24 * 1024 * 1024:
        compiler_kwargs["vmem_limit_bytes"] = min(
            2 * (mats_bytes + tile_bytes), 100 * 1024 * 1024)

    mat_spec = pl.BlockSpec((N, 5 * N), lambda i, flag_ref: (0, 0))   # resident
    row_spec = pl.BlockSpec((tm, N), lambda i, flag_ref: (i, 0))

    out = pl.pallas_call(
        modeleq_kernel,
        out_shape=jax.ShapeDtypeStruct((m_pad, N), jnp.float32),
        grid_spec=pltpu.PrefetchScalarGridSpec(
            num_scalar_prefetch=1,
            grid=(m_pad // tm,),
            in_specs=[mat_spec, row_spec],
            out_specs=row_spec,
        ),
        compiler_params=pltpu.CompilerParams(**compiler_kwargs),
    )(flag, mats_cat, Y)
    return out[:M]


def modeleq_forward(t, y, mats_cat, t_start, T_period):
    """Pallas implementation of ModelEq.forward(t, y) for a single state y."""
    N = y.shape[0]
    out = modeleq_rhs_batched(t, y.reshape(1, N), mats_cat, t_start, T_period)
    return out[0]


if __name__ == "__main__":
    # Synthetic model size: 8 age groups, 16 compartments per age group
    # (s, e1..e3, i1..i3, h1..h2, ic1..ic2, icr1..icr2, v_0, r, d)  -> s_mtx = 128
    n_age = 8
    n_comp = 16
    N = n_age * n_comp                      # s_mtx

    key = jax.random.PRNGKey(0)
    k_a, k_t, k_b, k_v1, k_v2, k_y, k_yb = jax.random.split(key, 7)

    # Deterministic synthetic "constant matrices" (stand-ins for MatrixGenerator output).
    A     = jax.random.normal(k_a, (N, N), jnp.float32) * 0.05
    T_mat = jax.random.normal(k_t, (N, N), jnp.float32) * 0.05
    B     = jax.random.normal(k_b, (N, N), jnp.float32) * 0.05
    V_1   = jax.random.uniform(k_v1, (N, N), jnp.float32, 0.0, 0.01)
    V_2   = jax.random.uniform(k_v2, (N, N), jnp.float32, 0.1, 1.0)   # keeps V_2 @ y > 0

    # Positive population state vector.
    y = jax.random.uniform(k_y, (N,), jnp.float32, 1.0, 100.0)

    # Vaccination period parameters (ps['t_start'], ps['T']).
    t_start, T_period = 5.0, 20.0
    t_in, t_out = 10.0, 100.0

    # One-time constant-matrix preprocessing (hoisted out of the RHS eval).
    mats_cat = jax.block_until_ready(prepare_modeleq_mats(A, T_mat, B, V_1, V_2))

    # --- single-state forward (matches ModelEq.forward), inside the window ---
    out = jax.block_until_ready(modeleq_forward(t_in, y, mats_cat, t_start, T_period))
    vacc_ref = (V_1 @ y) / (V_2 @ y)
    ref = (A @ y) * (T_mat @ y) + B @ y + vacc_ref
    assert out.shape == (N,)
    assert jnp.allclose(out, ref, rtol=1e-4, atol=1e-3), "single-state (active) mismatch"

    # --- single-state forward, outside the vaccination window ---
    out_off = jax.block_until_ready(
        modeleq_forward(t_out, y, mats_cat, t_start, T_period))
    ref_off = (A @ y) * (T_mat @ y) + B @ y
    assert jnp.allclose(out_off, ref_off, rtol=1e-4, atol=1e-3), \
        "single-state (inactive) mismatch"

    # --- batched RHS: M ensemble / RK-stage states, multi-tile grid + padding ---
    M = 200
    Y = jax.random.uniform(k_yb, (M, N), jnp.float32, 1.0, 100.0)
    out_b = jax.block_until_ready(
        modeleq_rhs_batched(t_in, Y, mats_cat, t_start, T_period))
    vacc_b = (Y @ V_1.T) / (Y @ V_2.T)
    ref_b = (Y @ A.T) * (Y @ T_mat.T) + Y @ B.T + vacc_b
    assert out_b.shape == (M, N)
    assert jnp.allclose(out_b, ref_b, rtol=1e-4, atol=1e-3), "batched mismatch"

    print("KERNEL_OK")
</pallas_src>

<mosaic_0001>
module attributes {stable_mosaic.version = 11 : i64} {
  func.func @modeleq_kernel(%arg0: i32, %arg1: memref<1xi32, #tpu.memory_space<smem>>, %arg2: memref<128x640xf32, #tpu.memory_space<vmem>>, %arg3: memref<8x128xf32, #tpu.memory_space<vmem>>, %arg4: memref<8x128xf32, #tpu.memory_space<vmem>>) attributes {dimension_semantics = [#tpu.dimension_semantics<parallel>], iteration_bounds = array<i64: 1>, scalar_prefetch = 1 : i64, scratch_operands = 0 : i64, tpu.core_type = #tpu.core_type<tc>, window_params = [{pipeline_mode = #tpu.pipeline_mode<synchronous>, transform_indices = @transform_0, window_bounds = array<i64: 128, 640>}, {transform_indices = @transform_1, window_bounds = array<i64: 8, 128>}, {transform_indices = @transform_2, window_bounds = array<i64: 8, 128>}]} {
    %c0 = arith.constant 0 : index
    %c0_0 = arith.constant 0 : index
    %0 = vector.load %arg3[%c0, %c0_0] : memref<8x128xf32, #tpu.memory_space<vmem>>, vector<8x128xf32>
    %c0_1 = arith.constant 0 : index
    %c0_2 = arith.constant 0 : index
    %1 = vector.load %arg2[%c0_1, %c0_2] : memref<128x640xf32, #tpu.memory_space<vmem>>, vector<128x640xf32>
    %cst = arith.constant dense<0.000000e+00> : vector<8x640xf32>
    %2 = tpu.matmul %0, %1, %cst {dimension_numbers = #tpu.dot_dimension_numbers<[1], [0], [0], [1], [0, 0, 1, 1], [], []>} : vector<8x128xf32>, vector<128x640xf32>, vector<8x640xf32> -> vector<8x640xf32>
    %3 = vector.extract_strided_slice %2 {offsets = [0, 0], sizes = [8, 128], strides = [1, 1]} : vector<8x640xf32> to vector<8x128xf32>
    %4 = vector.extract_strided_slice %2 {offsets = [0, 128], sizes = [8, 128], strides = [1, 1]} : vector<8x640xf32> to vector<8x128xf32>
    %5 = vector.extract_strided_slice %2 {offsets = [0, 256], sizes = [8, 128], strides = [1, 1]} : vector<8x640xf32> to vector<8x128xf32>
    %6 = vector.extract_strided_slice %2 {offsets = [0, 384], sizes = [8, 128], strides = [1, 1]} : vector<8x640xf32> to vector<8x128xf32>
    %7 = vector.extract_strided_slice %2 {offsets = [0, 512], sizes = [8, 128], strides = [1, 1]} : vector<8x640xf32> to vector<8x128xf32>
    %c0_3 = arith.constant 0 : index
    %8 = memref.load %arg1[%c0_3] : memref<1xi32, #tpu.memory_space<smem>>
    %c0_i32 = arith.constant 0 : i32
    %9 = arith.cmpi sgt, %8, %c0_i32 : i32
    %cst_4 = arith.constant 1.000000e+00 : f32
    %10 = vector.broadcast %cst_4 : f32 to vector<8x128xf32>
    %11 = arith.select %9, %7, %10 : vector<8x128xf32>
    %12 = tpu.reciprocal %11 {approx = true} : vector<8x128xf32> -> vector<8x128xf32>
    %13 = arith.mulf %6, %12 : vector<8x128xf32>
    %cst_5 = arith.constant 0.000000e+00 : f32
    %14 = vector.broadcast %cst_5 : f32 to vector<8x128xf32>
    %15 = arith.select %9, %13, %14 : vector<8x128xf32>
    %16 = arith.mulf %3, %4 : vector<8x128xf32>
    %17 = arith.addf %16, %5 : vector<8x128xf32>
    %18 = arith.addf %17, %15 : vector<8x128xf32>
    %c0_6 = arith.constant 0 : index
    %c0_7 = arith.constant 0 : index
    %19 = vector.load %arg4[%c0_6, %c0_7] : memref<8x128xf32, #tpu.memory_space<vmem>>, vector<8x128xf32>
    tpu.vector_store %arg4[%c0_6, %c0_7], %18 {strides = array<i32>} : memref<8x128xf32, #tpu.memory_space<vmem>>, vector<8x128xf32>,
    return
  }
  func.func @transform_0(%arg0: i32, %arg1: memref<1xi32, #tpu.memory_space<smem>>) -> (i32, i32) {
    %c0_i32 = arith.constant 0 : i32
    %c0_i32_0 = arith.constant 0 : i32
    %c0_i32_1 = arith.constant 0 : i32
    return %c0_i32, %c0_i32_0 : i32, i32
  }
  func.func @transform_1(%arg0: i32, %arg1: memref<1xi32, #tpu.memory_space<smem>>) -> (i32, i32) {
    %c0_i32 = arith.constant 0 : i32
    %c0_i32_0 = arith.constant 0 : i32
    return %arg0, %c0_i32 : i32, i32
  }
  func.func @transform_2(%arg0: i32, %arg1: memref<1xi32, #tpu.memory_space<smem>>) -> (i32, i32) {
    %c0_i32 = arith.constant 0 : i32
    %c0_i32_0 = arith.constant 0 : i32
    return %arg0, %c0_i32 : i32, i32
  }
}

</mosaic_0001>

<bundles_post_ra>
// kernel: tpu_custom_call.1
= control target key start
LH: loop header
LB: loop body
LE: loop exit
PB: predicated region body
PF: predicated region fallthrough
CT: control target
= control target key end

     0   :  { %9 = vsyncpa [#allocation5], 0  ;;  %s654_s0 = inlined_call_operand.<no memory space> [shape: s32[1], index: 0, kind: input, shape index: {}]   ;;  %s655_s1 = inlined_call_operand.hbm [shape: f32[128,640], index: 1, kind: input, shape index: {}]   ;;  %s656_s2 = inlined_call_operand.hbm [shape: f32[8,128], index: 2, kind: input, shape index: {}]   ;;  %s657_s3 = inlined_call_operand.hbm [shape: f32[8,128], index: 3, kind: output, shape index: {}]  }
   0x1   :  { %10 = vsyncpa [#allocation8], 0 }
   0x2   :  { %11 = vsyncpa [#allocation6], 0  ;;  %s584_s12 = smov [#allocation4]   ;;  %s512_s16 = scalar_lea.hbm %s655_s1, 10240 }
   0x3   :  { %s17_s13 = sshll.u32 %s584_s12, 4  ;;  %p513_p0 = scmp.ne.s32.totalorder %s655_s1, %s512_s16  ;;  %s18_s13 = int_to_ptr.vmem [resolvable:$true] %s17_s13 }
   0x4   :  { %p516_p1 = scmp.lt.u32.totalorder %s512_s16, %s655_s1 }
   0x6   :  { %p518_p2 = pnand %p516_p1, %p513_p0 }
   0x8   :  { %521 = shalt.err (!%p518_p2)
}
   0x9   :  { %s522_s21 = scalar_lea.vmem %s18_s13, 10240  ;;  %p527_p4 = scmp.lt.s32.totalorder %s18_s13, %s18_s13 }
   0xa   :  { %p523_p3 = scmp.ne.s32.totalorder %s18_s13, %s522_s21  ;;  %p528_p5 = scmp.lt.s32.totalorder %s522_s21, %s522_s21 }
   0xc   :  { %p529_p6 = por %p528_p5, %p527_p4 }
   0xe   :  { %p530_p7 = pnand %p529_p6, %p523_p3 }
  0x10   :  { %533 = shalt.err (!%p530_p7)
}
  0x11   :  { %s585_s22 = smov 640   ;;  %s586_s23 = smov 40  }
  0x12   :  { %23 = dma.hbm_to_vmem [thread:$0]  %s655_s1, 10240, %s18_s13, [#allocation5], %s585_s22, %s585_s22, %s586_s23  }
  0x13   :  { %s587_s26 = smov [#allocation7]   ;;  %s534_s30 = scalar_lea.hbm %s656_s2, 128 }
  0x14   :  { %s30_s27 = sshll.u32 %s587_s26, 4  ;;  %p535_p8 = scmp.ne.s32.totalorder %s656_s2, %s534_s30  ;;  %s31_s27 = int_to_ptr.vmem [resolvable:$true] %s30_s27 }
  0x15   :  { %p538_p9 = scmp.lt.u32.totalorder %s534_s30, %s656_s2 }
  0x17   :  { %p540_p10 = pnand %p538_p9, %p535_p8 }
  0x19   :  { %543 = shalt.err (!%p540_p10)
}
  0x1a   :  { %s544_s8 = scalar_lea.vmem %s31_s27, 128  ;;  %p549_p12 = scmp.lt.s32.totalorder %s31_s27, %s31_s27 }
  0x1b   :  { %p545_p11 = scmp.ne.s32.totalorder %s31_s27, %s544_s8  ;;  %p550_p13 = scmp.lt.s32.totalorder %s544_s8, %s544_s8 }
  0x1d   :  { %p551_p0 = por %p550_p13, %p549_p12 }
  0x1f   :  { %p552_p1 = pnand %p551_p0, %p545_p11 }
  0x21   :  { %555 = shalt.err (!%p552_p1)
}
  0x22   :  { %33 = dma.hbm_to_vmem [thread:$0]  %s656_s2, 128, %s31_s27, [#allocation8]  }
  0x23   :  { %578 = dma.done.wait [#allocation5], 10240  }
  0x24   :  { %579 = vsyncadd [#allocation5], 4294957056 }
  0x25   :  { %580 = dma.done.wait [#allocation8], 128  }
  0x26   :  { %581 = vsyncadd [#allocation8], 4294967168  ;;  %v588_v0 = vmov 0.0   ;;  %v42_v1 = vld [vmem:[#allocation4 + $0x8] sm:$0xff]  ;;  %v47_v2 = vld [vmem:[#allocation4 + $0x30] sm:$0xff]  ;;  %vm590_vm0 = vmmov 0  }
  0x27   :  { %185 = vmatprep.mubr.f32.mxu0 %v588_v0  ;;  %256 = vmatprep.mubr.f32.mxu1 %v588_v0  ;;  %v41_v3 = vld [vmem:[#allocation4] sm:$0xff]  ;;  %v414_v4 = vpack.c.bf16 %v47_v2, %v42_v1  ;;  %v46_v5 = vld [vmem:[#allocation4 + $0x28] sm:$0xff]  ;;  %v44_v6 = vld [vmem:[#allocation4 + $0x18] sm:$0xff]  ;;  %p334_p2 = scmp.gt.s32.totalorder %s654_s0, 0  ;;  %s591_s12 = smov [#allocation9]  }
  0x28   :  { %v49_v7 = vld [vmem:[#allocation4 + $0x40] sm:$0xff]  ;;  %v416_v8 = vpack.c.bf16 %v46_v5, %v41_v3  ;;  %v52_v10 = vld [vmem:[#allocation4 + $0x58] sm:$0xff]  ;;  %v43_v12 = vld [vmem:[#allocation4 + $0x10] sm:$0xff]  ;;  %s352_s13 = sshll.u32 %s591_s12, 4  ;;  %s353_s13 = int_to_ptr.vmem [resolvable:$true] %s352_s13 }
  0x29   :  { %v446_v9 = vpack.c.bf16 %v49_v7, %v44_v6  ;;  %v57_v11 = vld [vmem:[#allocation4 + $0x80] sm:$0xff]  ;;  %415 = vmatprep.subr.bf16.mxu0 %v414_v4  ;;  %v48_v14 = vld [vmem:[#allocation4 + $0x38] sm:$0xff]  ;;  %v51_v15 = vld [vmem:[#allocation4 + $0x50] sm:$0xff]  ;;  %s335_s11 = scalar_select %p334_p2, 1, 0 }
  0x2a   :  { %v418_v13 = vpack.c.bf16 %v57_v11, %v52_v10  ;;  %v56_v16 = vld [vmem:[#allocation4 + $0x78] sm:$0xff]  ;;  %417 = vmatpush1.bf16.msra.mxu0 %v416_v8  ;;  %v448_v17 = vpack.c.bf16 %v48_v14, %v43_v12  ;;  %v54_v19 = vld [vmem:[#allocation4 + $0x68] sm:$0xff]  ;;  %v59_v20 = vld [vmem:[#allocation4 + $0x90] sm:$0xff]  ;;  %s556_s14 = scalar_lea.vmem %s353_s13, 128  ;;  %p561_p4 = scmp.lt.s32.totalorder %s353_s13, %s353_s13 }
  0x2b   :  { %447 = vmatprep.subr.bf16.mxu1 %v446_v9  ;;  %v420_v18 = vpack.c.bf16 %v56_v16, %v51_v15  ;;  %v62_v21 = vld [vmem:[#allocation4 + $0xa8] sm:$0xff]  ;;  %v450_v22 = vpack.c.bf16 %v59_v20, %v54_v19  ;;  %v67_v23 = vld [vmem:[#allocation4 + $0xd0] sm:$0xff]  ;;  %v53_v24 = vld [vmem:[#allocation4 + $0x60] sm:$0xff]  ;;  %p557_p3 = scmp.ne.s32.totalorder %s353_s13, %s556_s14  ;;  %p562_p5 = scmp.lt.s32.totalorder %s556_s14, %s556_s14 }
  0x2c   :  { %419 = vmatprep.subr.bf16.mxu0 %v418_v13  ;;  %v58_v25 = vld [vmem:[#allocation4 + $0x88] sm:$0xff]  ;;  %449 = vmatpush1.bf16.msra.mxu1 %v448_v17  ;;  %v422_v26 = vpack.c.bf16 %v67_v23, %v62_v21  ;;  %v61_v28 = vld [vmem:[#allocation4 + $0xa0] sm:$0xff]  ;;  %v64_v30 = vld [vmem:[#allocation4 + $0xb8] sm:$0xff] }
  0x2d   :  { %v452_v27 = vpack.c.bf16 %v58_v25, %v53_v24  ;;  %v66_v29 = vld [vmem:[#allocation4 + $0xc8] sm:$0xff]  ;;  %451 = vmatprep.subr.bf16.mxu1 %v450_v22  ;;  %v69_v31 = vld [vmem:[#allocation4 + $0xe0] sm:$0xff]  ;;  %v72_v32 = vld [vmem:[#allocation4 + $0xf8] sm:$0xff]  ;;  %p563_p6 = por %p562_p5, %p561_p4 }
  0x2e   :  { %v77_v33 = vld [vmem:[#allocation4 + $0x120] sm:$0xff]  ;;  %421 = vmatpush1.bf16.msra.mxu0 %v420_v18  ;;  %v424_v34 = vpack.c.bf16 %v66_v29, %v61_v28  ;;  %v454_v35 = vpack.c.bf16 %v69_v31, %v64_v30  ;;  %v63_v36 = vld [vmem:[#allocation4 + $0xb0] sm:$0xff]  ;;  %v68_v37 = vld [vmem:[#allocation4 + $0xd8] sm:$0xff] }
  0x2f   :  { %v71_v38 = vld [vmem:[#allocation4 + $0xf0] sm:$0xff]  ;;  %423 = vmatprep.subr.bf16.mxu0 %v422_v26  ;;  %v426_v39 = vpack.c.bf16 %v77_v33, %v72_v32  ;;  %v76_v40 = vld [vmem:[#allocation4 + $0x118] sm:$0xff]  ;;  %v74_v41 = vld [vmem:[#allocation4 + $0x108] sm:$0xff]  ;;  %v456_v43 = vpack.c.bf16 %v68_v37, %v63_v36  ;;  %p564_p7 = pnand %p563_p6, %p557_p3 }
  0x30   :  { %v79_v42 = vld [vmem:[#allocation4 + $0x130] sm:$0xff]  ;;  %453 = vmatpush1.bf16.msra.mxu1 %v452_v27  ;;  %v82_v44 = vld [vmem:[#allocation4 + $0x148] sm:$0xff]  ;;  %v73_v47 = vld [vmem:[#allocation4 + $0x100] sm:$0xff]  ;;  %v428_v49 = vpack.c.bf16 %v76_v40, %v71_v38  ;;  %v589_v38 = vmov 0.0|0.0  }
  0x31   :  { %v87_v45 = vld [vmem:[#allocation4 + $0x170] sm:$0xff]  ;;  %455 = vmatprep.subr.bf16.mxu1 %v454_v35  ;;  %v458_v46 = vpack.c.bf16 %v79_v42, %v74_v41  ;;  %v78_v48 = vld [vmem:[#allocation4 + $0x128] sm:$0xff]  ;;  %v84_v50 = vld [vmem:[#allocation4 + $0x158] sm:$0xff] }
  0x32   :  { %425 = vmatpush1.bf16.msra.mxu0 %v424_v34  ;;  %v89_v51 = vld [vmem:[#allocation4 + $0x180] sm:$0xff]  ;;  %v430_v52 = vpack.c.bf16 %v87_v45, %v82_v44  ;;  %v86_v54 = vld [vmem:[#allocation4 + $0x168] sm:$0xff]  ;;  %v460_v55 = vpack.c.bf16 %v78_v48, %v73_v47  ;;  %v92_v56 = vld [vmem:[#allocation4 + $0x198] sm:$0xff] }
  0x33   :  { %427 = vmatprep.subr.bf16.mxu0 %v426_v39  ;;  %v81_v53 = vld [vmem:[#allocation4 + $0x140] sm:$0xff]  ;;  %v462_v58 = vpack.c.bf16 %v89_v51, %v84_v50  ;;  %v83_v59 = vld [vmem:[#allocation4 + $0x150] sm:$0xff]  ;;  %v88_v60 = vld [vmem:[#allocation4 + $0x178] sm:$0xff] }
  0x34   :  { %457 = vmatpush1.bf16.msra.mxu1 %v456_v43  ;;  %v97_v57 = vld [vmem:[#allocation4 + $0x1c0] sm:$0xff]  ;;  %v432_v61 = vpack.c.bf16 %v86_v54, %v81_v53  ;;  %v94_v62 = vld [vmem:[#allocation4 + $0x1a8] sm:$0xff]  ;;  %v99_v63 = vld [vmem:[#allocation4 + $0x1d0] sm:$0xff]  ;;  %v464_v4 = vpack.c.bf16 %v88_v60, %v83_v59 }
  0x35   :  { %459 = vmatprep.subr.bf16.mxu1 %v458_v46  ;;  %v434_v1 = vpack.c.bf16 %v97_v57, %v92_v56  ;;  %v91_v2 = vld [vmem:[#allocation4 + $0x190] sm:$0xff]  ;;  %v96_v3 = vld [vmem:[#allocation4 + $0x1b8] sm:$0xff]  ;;  %v102_v5 = vld [vmem:[#allocation4 + $0x1e8] sm:$0xff]  ;;  %v466_v7 = vpack.c.bf16 %v99_v63, %v94_v62 }
  0x36   :  { %429 = vmatpush1.bf16.msra.mxu0 %v428_v49  ;;  %v107_v6 = vld [vmem:[#allocation4 + $0x210] sm:$0xff]  ;;  %v93_v8 = vld [vmem:[#allocation4 + $0x1a0] sm:$0xff]  ;;  %v98_v9 = vld [vmem:[#allocation4 + $0x1c8] sm:$0xff]  ;;  %v436_v10 = vpack.c.bf16 %v96_v3, %v91_v2  ;;  %v336_v2 = vstv %s335_s11 }
  0x37   :  { %431 = vmatprep.subr.bf16.mxu0 %v430_v52  ;;  %v104_v11 = vld [vmem:[#allocation4 + $0x1f8] sm:$0xff]  ;;  %v109_v12 = vld [vmem:[#allocation4 + $0x220] sm:$0xff]  ;;  %v438_v13 = vpack.c.bf16 %v107_v6, %v102_v5  ;;  %v106_v15 = vld [vmem:[#allocation4 + $0x208] sm:$0xff]  ;;  %v468_v16 = vpack.c.bf16 %v98_v9, %v93_v8  ;;  %vm337_vm1 = vcmp.eq.s32.totalorder %v336_v2, 1 }
  0x38   :  { %461 = vmatpush1.bf16.msra.mxu1 %v460_v55  ;;  %v101_v14 = vld [vmem:[#allocation4 + $0x1e0] sm:$0xff]  ;;  %v112_v17 = vld [vmem:[#allocation4 + $0x238] sm:$0xff]  ;;  %v470_v19 = vpack.c.bf16 %v109_v12, %v104_v11  ;;  %v103_v20 = vld [vmem:[#allocation4 + $0x1f0] sm:$0xff] }
  0x39   :  { %463 = vmatprep.subr.bf16.mxu1 %v462_v58  ;;  %v117_v18 = vld [vmem:[#allocation4 + $0x260] sm:$0xff]  ;;  %v108_v21 = vld [vmem:[#allocation4 + $0x218] sm:$0xff]  ;;  %v440_v22 = vpack.c.bf16 %v106_v15, %v101_v14  ;;  %v114_v23 = vld [vmem:[#allocation4 + $0x248] sm:$0xff] }
  0x3a   :  { %433 = vmatpush1.bf16.msra.mxu0 %v432_v61  ;;  %v119_v24 = vld [vmem:[#allocation4 + $0x270] sm:$0xff]  ;;  %v442_v25 = vpack.c.bf16 %v117_v18, %v112_v17  ;;  %v116_v27 = vld [vmem:[#allocation4 + $0x258] sm:$0xff]  ;;  %v472_v28 = vpack.c.bf16 %v108_v21, %v103_v20  ;;  %v113_v30 = vld [vmem:[#allocation4 + $0x240] sm:$0xff] }
  0x3b   :  { %435 = vmatprep.subr.bf16.mxu0 %v434_v1  ;;  %v111_v26 = vld [vmem:[#allocation4 + $0x230] sm:$0xff]  ;;  %v474_v29 = vpack.c.bf16 %v119_v24, %v114_v23  ;;  %v118_v31 = vld [vmem:[#allocation4 + $0x268] sm:$0xff]  ;;  %v45_v33 = vld [vmem:[#allocation4 + $0x20] sm:$0xff] }
  0x3c   :  { %465 = vmatpush1.bf16.msra.mxu1 %v464_v4  ;;  %v444_v32 = vpack.c.bf16 %v116_v27, %v111_v26  ;;  %v50_v34 = vld [vmem:[#allocation4 + $0x48] sm:$0xff]  ;;  %v476_v35 = vpack.c.bf16 %v118_v31, %v113_v30  ;;  %v40_v36 = vld [vmem:[#allocation7] sm:$0xff]  ;;  %v55_v39 = vld [vmem:[#allocation4 + $0x70] sm:$0xff] }
  0x3d   :  { %467 = vmatprep.subr.bf16.mxu1 %v466_v7  ;;  %v479_v37 = vpack.c.bf16 %v50_v34, %v45_v33  ;;  %v60_v40 = vld [vmem:[#allocation4 + $0x98] sm:$0xff]  ;;  %v65_v42 = vld [vmem:[#allocation4 + $0xc0] sm:$0xff]  ;;  %v70_v43 = vld [vmem:[#allocation4 + $0xe8] sm:$0xff] }
  0x3e   :  { %437 = vmatpush1.bf16.msra.mxu0 %v436_v10  ;;  %v482_v41 = vpack.c.bf16 %v60_v40, %v55_v39  ;;  %v485_v44 = vpack.c.bf16 %v70_v43, %v65_v42  ;;  %v75_v45 = vld [vmem:[#allocation4 + $0x110] sm:$0xff]  ;;  %v80_v46 = vld [vmem:[#allocation4 + $0x138] sm:$0xff]  ;;  %v85_v48 = vld [vmem:[#allocation4 + $0x160] sm:$0xff] }
  0x3f   :  { %439 = vmatprep.subr.bf16.mxu0 %v438_v13  ;;  %v488_v47 = vpack.c.bf16 %v80_v46, %v75_v45  ;;  %v90_v49 = vld [vmem:[#allocation4 + $0x188] sm:$0xff]  ;;  %v95_v51 = vld [vmem:[#allocation4 + $0x1b0] sm:$0xff]  ;;  %v100_v52 = vld [vmem:[#allocation4 + $0x1d8] sm:$0xff] }
  0x40   :  { %469 = vmatpush1.bf16.msra.mxu1 %v468_v16  ;;  %v491_v50 = vpack.c.bf16 %v90_v49, %v85_v48  ;;  %v105_v53 = vld [vmem:[#allocation4 + $0x200] sm:$0xff]  ;;  %v110_v54 = vld [vmem:[#allocation4 + $0x228] sm:$0xff]  ;;  %v115_v56 = vld [vmem:[#allocation4 + $0x250] sm:$0xff] }
  0x41   :  { %471 = vmatprep.subr.bf16.mxu1 %v470_v19  ;;  %v497_v55 = vpack.c.bf16 %v110_v54, %v105_v53  ;;  %v120_v57 = vld [vmem:[#allocation4 + $0x278] sm:$0xff] }
  0x42   :  { %441 = vmatpush1.bf16.msra.mxu0 %v440_v22  ;;  %v500_v58 = vpack.c.bf16 %v120_v57, %v115_v56 }
  0x43   :  { %443 = vmatprep.subr.bf16.mxu0 %v442_v25 }
  0x44   :  { %473 = vmatpush1.bf16.msra.mxu1 %v472_v28 }
  0x45   :  { %475 = vmatprep.subr.bf16.mxu1 %v474_v29 }
  0x46   :  { %445 = vmatpush1.bf16.msra.mxu0 %v444_v32 }
  0x47   :  { %478 = vmatprep.subr.bf16.mxu0 %v589_v38 }
  0x48   :  { %477 = vmatpush1.bf16.msra.mxu1 %v476_v35 }
  0x49   :  { %186 = vmatmul.mubr.f32.vlgmr.msra.gmra.mrb[0].mxu0 %v40_v36 }
  0x4a   :  { %480 = vmatpush3.bf16.msra.mxu0 %v479_v37  ;;  %411 = vmatprep.mubr.msk.f32.mxu0 %vm590_vm0, %v588_v0  ;;  %v494_v0 = vpack.c.bf16 %v100_v52, %v95_v51 }
  0x4b   :  { %257 = vmatmul.mubr.f32.vlgmr.msra.gmra.mrb[0].mxu1 %v40_v36  ;;  %481 = vmatprep.subr.bf16.mxu0 %v589_v38 }
  0x4e   :  { %483 = vmatpush3.bf16.msra.mxu0 %v482_v41 }
  0x4f   :  { %484 = vmatprep.subr.bf16.mxu0 %v589_v38 }
  0x52   :  { %486 = vmatpush3.bf16.msra.mxu0 %v485_v44 }
  0x53   :  { %487 = vmatprep.subr.bf16.mxu0 %v589_v38 }
  0x56   :  { %489 = vmatpush3.bf16.msra.mxu0 %v488_v47 }
  0x57   :  { %490 = vmatprep.subr.bf16.mxu0 %v589_v38 }
  0x5a   :  { %492 = vmatpush3.bf16.msra.mxu0 %v491_v50 }
  0x5b   :  { %493 = vmatprep.subr.bf16.mxu0 %v589_v38 }
  0x5e   :  { %495 = vmatpush3.bf16.msra.mxu0 %v494_v0 }
  0x5f   :  { %496 = vmatprep.subr.bf16.mxu0 %v589_v38 }
  0x62   :  { %498 = vmatpush3.bf16.msra.mxu0 %v497_v55 }
  0x63   :  { %499 = vmatprep.subr.bf16.mxu0 %v589_v38 }
  0x66   :  { %501 = vmatpush3.bf16.msra.mxu0 %v500_v58 }
  0x69   :  { %412 = vmatmul.mubr.f32.vlgmr.msra.gmra.mrb[2].mxu0 %v40_v36 }
 0x11c   :  { %v187_v59 = vpop.f32.mrb[0].mxu0 }
 0x11d   :  { %v189_v60 = vpop.f32.mrb[1].mxu0 }
 0x11e   :  { %v342_v61 = vmul.f32 %v189_v60, %v187_v59  ;;  %v258_v62 = vpop.f32.mrb[0].mxu1 }
 0x11f   :  { %v260_v63 = vpop.f32.mrb[1].mxu1 }
 0x120   :  { %v343_v1 = vadd.f32 %v342_v61, %v258_v62 }
 0x13c   :  { %v329_v3 = vpop.f32.mrb[2].mxu0 }
 0x13d   :  { %v338_v4 = vsel %vm337_vm1, %v329_v3, 1.0  ;;  %v413_v5 = vpop.f32.mrb[3].mxu0 }
 0x13e   :  { %510 = vrcp.f32 %v338_v4 }
 0x148   :  { %v511_v6 = vpop.eup %510 }
 0x149   :  { %v340_v7 = vmul.f32 %v511_v6, %v260_v63 }
 0x14b   :  { %v341_v8 = vsel %vm337_vm1, %v340_v7, 0.0 }
 0x14c   :  { %v344_v9 = vadd.f32 %v343_v1, %v341_v8 }
 0x14e   :  { %345 = vst [vmem:[#allocation9] sm:$0xff] %v344_v9 }
 0x14f   :  { %567 = shalt.err (!%p564_p7)
}
 0x150   :  { %s568_s16 = scalar_lea.hbm %s657_s3, 128 }
 0x151   :  { %p569_p8 = scmp.ne.s32.totalorder %s657_s3, %s568_s16  ;;  %p572_p9 = scmp.lt.u32.totalorder %s568_s16, %s657_s3 }
 0x153   :  { %p574_p10 = pnand %p572_p9, %p569_p8 }
 0x155   :  { %577 = shalt.err (!%p574_p10)
}
 0x156   :  { %355 = dma.vmem_to_hbm [thread:$0]  %s353_s13, 128, %s657_s3, [#allocation6]  }
 0x157   :  { %582 = dma.done.wait [#allocation6], 128  }
 0x158   :  { %583 = vsyncadd [#allocation6], 4294967168 }
 0x159   :  { %359 = vsyncpa [#allocation5], 1 }
 0x15a   :  { %360 = vsyncpa [#allocation8], 1 }
 0x15b   :  { %361 = vsyncpa [#allocation6], 1 }

</bundles_post_ra>
